<compile_context>
chip_gen: v6e
topology: v6e:2x2x1
jax: 0.10.0
libtpu: 0.0.40
codegen_flags: <defaults>
</compile_context>

<pallas_src>
import functools

import jax
import jax.numpy as jnp
from jax.experimental import pallas as pl
from jax.experimental.pallas import tpu as pltpu


IN_DIM = 28 * 28          # 784
HIDDEN = 128
LATENT = 32               # latent_dim


def _autoencoder_kernel(x_ref,
                        w1_ref, b1_ref,
                        w23_ref, b23_ref,
                        w4_ref, b4_ref,
                        o_ref):
    """Fused MLP: sigmoid(relu(relu(x W1 + b1) W23 + b23) W4 + b4).

    x and all weights arrive as bf16 (MXU-native); accumulation and the
    epilogue (bias add, ReLU, sigmoid) run in f32.
    """
    x = x_ref[...]                                               # bf16 tile

    # --- encoder first layer: 784 -> 128, ReLU ---
    h1 = jnp.dot(x, w1_ref[...], preferred_element_type=jnp.float32) + b1_ref[...]
    h1 = jnp.maximum(h1, 0.0)

    # --- folded (latent-in + latent-out) linear pair: 128 -> 128, ReLU ---
    h2 = jnp.dot(h1.astype(jnp.bfloat16), w23_ref[...],
                 preferred_element_type=jnp.float32) + b23_ref[...]
    h2 = jnp.maximum(h2, 0.0)

    # --- decoder output layer: 128 -> 784, sigmoid ---
    y = jnp.dot(h2.astype(jnp.bfloat16), w4_ref[...],
                preferred_element_type=jnp.float32) + b4_ref[...]

    # Sigmoid: exp and reciprocal both ride the EUP slot (approx reciprocal
    # instead of a VPU divide); clamp keeps the result strictly inside [0, 1].
    sig = pl.reciprocal(1.0 + jnp.exp(-y), approx=True)
    o_ref[...] = jnp.clip(sig, 0.0, 1.0).astype(o_ref.dtype)


def prepare_params(params):
    """One-time kernel-ready weight prep (hoisted out of the forward path).

    Folds the two linear layers around the latent (no nonlinearity between):
      z = h1 W2 + b2 ; h2_pre = z W3 + b3  ==  h1 (W2 W3) + (b2 W3 + b3),
    casts matmul operands to bf16 and reshapes biases to (1, out) f32.
    """
    w1, b1, w2, b2, w3, b3, w4, b4 = params
    w23 = (w2 @ w3).astype(jnp.bfloat16)                         # (128, 128)
    b23 = (b2 @ w3 + b3).reshape(1, HIDDEN).astype(jnp.float32)
    return (w1.astype(jnp.bfloat16),
            b1.reshape(1, HIDDEN).astype(jnp.float32),
            w23, b23,
            w4.astype(jnp.bfloat16),
            b4.reshape(1, IN_DIM).astype(jnp.float32))


def _cdiv(a, b):
    return -(-a // b)


def _round16(v):
    return ((v + 15) // 16) * 16


def _choose_batch_tile(n, batch_tile):
    """Pick the batch tile.

    bf16 activations pack two rows per sublane, so tiles are kept at 16-row
    multiples; whenever the batch allows it the grid gets >= 2 steps so the
    "parallel" batch axis can be sharded across both v7x TensorCores.
    """
    tb = min(batch_tile, n)
    if tb < n or n >= 32:
        tb = max(16, (tb // 16) * 16)
    if tb >= n and n >= 32:
        # Whole batch would be a single grid step: split in two (megacore).
        tb = max(16, _round16(n // 2))
    tb = min(tb, n)
    steps = _cdiv(n, tb)
    if steps > 1:
        # Re-balance so the last (partial) block isn't tiny.
        tb = min(n, max(16, _round16(_cdiv(n, steps))))
    return tb


def encoder_decoder_forward(x_nchw, params, *, batch_tile=1024,
                            out_dtype=jnp.float32):
    """x_nchw: (N, 1, 28, 28) -> (N, 1, 28, 28) reconstruction.

    `params` must come from prepare_params().  The kernel is HBM-bandwidth
    bound, so activations enter in bf16; pass out_dtype=jnp.bfloat16 to also
    halve the writeback bytes when downstream consumers tolerate bf16.
    """
    n = x_nchw.shape[0]
    # nn.Flatten + one-time f32->bf16 cast (a no-op if the pipeline already
    # feeds bf16 images).
    x_flat = x_nchw.reshape(n, IN_DIM).astype(jnp.bfloat16)

    w1_bf, b1_2d, w23_bf, b23_2d, w4_bf, b4_2d = params

    tb = _choose_batch_tile(n, batch_tile)
    grid = (pl.cdiv(n, tb),)

    # Weights / biases: whole array as one block with a constant index_map ->
    # fetched once and kept resident in VMEM across the whole grid.
    # (pipeline_mode=pl.Buffered(1) would shave ~0.45 MiB of weight
    # double-buffering; not worth the extra compile surface here.)
    def whole(shape):
        return pl.BlockSpec(shape, lambda i: tuple(0 for _ in shape))

    out = pl.pallas_call(
        _autoencoder_kernel,
        out_shape=jax.ShapeDtypeStruct((n, IN_DIM), out_dtype),
        grid_spec=pltpu.PrefetchScalarGridSpec(
            num_scalar_prefetch=0,
            grid=grid,
            in_specs=[
                pl.BlockSpec((tb, IN_DIM), lambda i: (i, 0)),    # x tile (bf16)
                whole((IN_DIM, HIDDEN)), whole((1, HIDDEN)),     # W1, b1
                whole((HIDDEN, HIDDEN)), whole((1, HIDDEN)),     # W23, b23
                whole((HIDDEN, IN_DIM)), whole((1, IN_DIM)),     # W4, b4
            ],
            out_specs=pl.BlockSpec((tb, IN_DIM), lambda i: (i, 0)),
        ),
        compiler_params=pltpu.CompilerParams(
            dimension_semantics=("parallel",),
            # Large batch tiles overshoot v5e's 16 MiB scoped-VMEM default;
            # 32 MiB fits every generation (v7x physical VMEM is 64 MiB).
            vmem_limit_bytes=32 * 1024 * 1024,
        ),
    )(x_flat, w1_bf, b1_2d, w23_bf, b23_2d, w4_bf, b4_2d)

    return out.reshape(n, 1, 28, 28)                             # nn.Unflatten


def init_params(key, latent_dim=LATENT):
    """Deterministic init mimicking nn.Linear's U(-1/sqrt(fan_in), 1/sqrt(fan_in)).

    Weights are stored transposed relative to PyTorch ((in, out) instead of
    (out, in)) so the kernel computes x @ W directly.
    """
    dims = [(IN_DIM, HIDDEN), (HIDDEN, latent_dim),
            (latent_dim, HIDDEN), (HIDDEN, IN_DIM)]
    params = []
    keys = jax.random.split(key, 2 * len(dims))
    for idx, (fan_in, fan_out) in enumerate(dims):
        bound = 1.0 / jnp.sqrt(jnp.float32(fan_in))
        w = jax.random.uniform(keys[2 * idx], (fan_in, fan_out),
                               jnp.float32, -bound, bound)
        b = jax.random.uniform(keys[2 * idx + 1], (fan_out,),
                               jnp.float32, -bound, bound)
        params += [w, b]
    return tuple(params)


def _reference_forward(x_nchw, params):
    """Plain-JAX f32 reference for correctness check."""
    w1, b1, w2, b2, w3, b3, w4, b4 = params
    x = x_nchw.reshape(x_nchw.shape[0], IN_DIM)
    h1 = jnp.maximum(x @ w1 + b1, 0.0)
    z = h1 @ w2 + b2
    h2 = jnp.maximum(z @ w3 + b3, 0.0)
    y = jax.nn.sigmoid(h2 @ w4 + b4)
    return y.reshape(-1, 1, 28, 28)


if __name__ == "__main__":
    key = jax.random.PRNGKey(0)
    k_params, k_x1, k_x2 = jax.random.split(key, 3)

    raw_params = init_params(k_params, LATENT)
    kparams = prepare_params(raw_params)      # one-time weight prep (hoisted)

    # Test 1: small batch, default tile -> single grid step (n < 32).
    batch1 = 16
    x1 = jax.random.uniform(k_x1, (batch1, 1, 28, 28), jnp.float32)   # NCHW
    fwd = jax.jit(functools.partial(encoder_decoder_forward, params=kparams))
    out1 = jax.block_until_ready(fwd(x1))
    ref1 = _reference_forward(x1, raw_params)
    assert out1.shape == (batch1, 1, 28, 28), out1.shape
    assert out1.dtype == jnp.float32, out1.dtype
    # bf16 activations/weights + approx reciprocal: post-sigmoid error ~1e-2.
    assert jnp.max(jnp.abs(out1 - ref1)) < 2.5e-2, "mismatch vs reference (test 1)"
    assert float(out1.min()) >= 0.0 and float(out1.max()) <= 1.0, "sigmoid range"

    # Test 2: tiny requested tile -> rounded up to 16 rows, 2-step grid with a
    # partial last block (24 = 16 + 8).
    batch2 = 24
    x2 = jax.random.uniform(k_x2, (batch2, 1, 28, 28), jnp.float32)
    out2 = jax.block_until_ready(
        jax.jit(functools.partial(encoder_decoder_forward, params=kparams,
                                  batch_tile=8))(x2))
    ref2 = _reference_forward(x2, raw_params)
    assert out2.shape == (batch2, 1, 28, 28), out2.shape
    assert jnp.max(jnp.abs(out2 - ref2)) < 2.5e-2, "mismatch vs reference (test 2)"

    # Test 3: bf16 output path (halves HBM writeback when downstream allows).
    out3 = jax.block_until_ready(
        jax.jit(functools.partial(encoder_decoder_forward, params=kparams,
                                  out_dtype=jnp.bfloat16))(x1))
    assert out3.dtype == jnp.bfloat16, out3.dtype
    assert jnp.max(jnp.abs(out3.astype(jnp.float32) - ref1)) < 3e-2, \
        "mismatch vs reference (test 3)"

    print("KERNEL_OK")
</pallas_src>

<mosaic_0001>
module attributes {stable_mosaic.version = 11 : i64} {
  func.func @_autoencoder_kernel(%arg0: i32, %arg1: memref<16x784xbf16, #tpu.memory_space<vmem>>, %arg2: memref<784x128xbf16, #tpu.memory_space<vmem>>, %arg3: memref<1x128xf32, #tpu.memory_space<vmem>>, %arg4: memref<128x128xbf16, #tpu.memory_space<vmem>>, %arg5: memref<1x128xf32, #tpu.memory_space<vmem>>, %arg6: memref<128x784xbf16, #tpu.memory_space<vmem>>, %arg7: memref<1x784xf32, #tpu.memory_space<vmem>>, %arg8: memref<16x784xf32, #tpu.memory_space<vmem>>) attributes {dimension_semantics = [#tpu.dimension_semantics<parallel>], iteration_bounds = array<i64: 1>, scalar_prefetch = 0 : i64, scratch_operands = 0 : i64, tpu.core_type = #tpu.core_type<tc>, window_params = [{transform_indices = @transform_0, window_bounds = array<i64: 16, 784>}, {pipeline_mode = #tpu.pipeline_mode<synchronous>, transform_indices = @transform_1, window_bounds = array<i64: 784, 128>}, {pipeline_mode = #tpu.pipeline_mode<synchronous>, transform_indices = @transform_2, window_bounds = array<i64: 1, 128>}, {pipeline_mode = #tpu.pipeline_mode<synchronous>, transform_indices = @transform_3, window_bounds = array<i64: 128, 128>}, {pipeline_mode = #tpu.pipeline_mode<synchronous>, transform_indices = @transform_4, window_bounds = array<i64: 1, 128>}, {pipeline_mode = #tpu.pipeline_mode<synchronous>, transform_indices = @transform_5, window_bounds = array<i64: 128, 784>}, {pipeline_mode = #tpu.pipeline_mode<synchronous>, transform_indices = @transform_6, window_bounds = array<i64: 1, 784>}, {transform_indices = @transform_7, window_bounds = array<i64: 16, 784>}]} {
    %c0 = arith.constant 0 : index
    %c0_0 = arith.constant 0 : index
    %0 = vector.load %arg1[%c0, %c0_0] : memref<16x784xbf16, #tpu.memory_space<vmem>>, vector<16x784xbf16>
    %c0_1 = arith.constant 0 : index
    %c0_2 = arith.constant 0 : index
    %1 = vector.load %arg2[%c0_1, %c0_2] : memref<784x128xbf16, #tpu.memory_space<vmem>>, vector<784x128xbf16>
    %cst = arith.constant dense<0.000000e+00> : vector<16x128xf32>
    %2 = tpu.matmul %0, %1, %cst {dimension_numbers = #tpu.dot_dimension_numbers<[1], [0], [0], [1], [0, 0, 1, 1], [], []>} : vector<16x784xbf16>, vector<784x128xbf16>, vector<16x128xf32> -> vector<16x128xf32>
    %c0_3 = arith.constant 0 : index
    %c0_4 = arith.constant 0 : index
    %3 = vector.load %arg3[%c0_3, %c0_4] : memref<1x128xf32, #tpu.memory_space<vmem>>, vector<1x128xf32>
    %4 = vector.broadcast %3 : vector<1x128xf32> to vector<16x128xf32>
    %5 = arith.addf %2, %4 : vector<16x128xf32>
    %cst_5 = arith.constant 0.000000e+00 : f32
    %6 = vector.broadcast %cst_5 : f32 to vector<16x128xf32>
    %7 = arith.maximumf %5, %6 : vector<16x128xf32>
    %8 = arith.truncf %7 : vector<16x128xf32> to vector<16x128xbf16>
    %c0_6 = arith.constant 0 : index
    %c0_7 = arith.constant 0 : index
    %9 = vector.load %arg4[%c0_6, %c0_7] : memref<128x128xbf16, #tpu.memory_space<vmem>>, vector<128x128xbf16>
    %cst_8 = arith.constant dense<0.000000e+00> : vector<16x128xf32>
    %10 = tpu.matmul %8, %9, %cst_8 {dimension_numbers = #tpu.dot_dimension_numbers<[1], [0], [0], [1], [0, 0, 1, 1], [], []>} : vector<16x128xbf16>, vector<128x128xbf16>, vector<16x128xf32> -> vector<16x128xf32>
    %c0_9 = arith.constant 0 : index
    %c0_10 = arith.constant 0 : index
    %11 = vector.load %arg5[%c0_9, %c0_10] : memref<1x128xf32, #tpu.memory_space<vmem>>, vector<1x128xf32>
    %12 = vector.broadcast %11 : vector<1x128xf32> to vector<16x128xf32>
    %13 = arith.addf %10, %12 : vector<16x128xf32>
    %cst_11 = arith.constant 0.000000e+00 : f32
    %14 = vector.broadcast %cst_11 : f32 to vector<16x128xf32>
    %15 = arith.maximumf %13, %14 : vector<16x128xf32>
    %16 = arith.truncf %15 : vector<16x128xf32> to vector<16x128xbf16>
    %c0_12 = arith.constant 0 : index
    %c0_13 = arith.constant 0 : index
    %17 = vector.load %arg6[%c0_12, %c0_13] : memref<128x784xbf16, #tpu.memory_space<vmem>>, vector<128x784xbf16>
    %cst_14 = arith.constant dense<0.000000e+00> : vector<16x784xf32>
    %18 = tpu.matmul %16, %17, %cst_14 {dimension_numbers = #tpu.dot_dimension_numbers<[1], [0], [0], [1], [0, 0, 1, 1], [], []>} : vector<16x128xbf16>, vector<128x784xbf16>, vector<16x784xf32> -> vector<16x784xf32>
    %c0_15 = arith.constant 0 : index
    %c0_16 = arith.constant 0 : index
    %19 = vector.load %arg7[%c0_15, %c0_16] : memref<1x784xf32, #tpu.memory_space<vmem>>, vector<1x784xf32>
    %20 = vector.broadcast %19 : vector<1x784xf32> to vector<16x784xf32>
    %21 = arith.addf %18, %20 : vector<16x784xf32>
    %cst_17 = arith.constant 0.000000e+00 : f32
    %22 = vector.broadcast %cst_17 : f32 to vector<16x784xf32>
    %23 = arith.subf %22, %21 : vector<16x784xf32>
    %24 = math.exp %23 : vector<16x784xf32>
    %cst_18 = arith.constant 1.000000e+00 : f32
    %25 = vector.broadcast %cst_18 : f32 to vector<16x784xf32>
    %26 = arith.addf %25, %24 : vector<16x784xf32>
    %27 = tpu.reciprocal %26 {approx = true} : vector<16x784xf32> -> vector<16x784xf32>
    %cst_19 = arith.constant 0.000000e+00 : f32
    %cst_20 = arith.constant 1.000000e+00 : f32
    %28 = vector.broadcast %cst_19 : f32 to vector<16x784xf32>
    %29 = arith.maximumf %28, %27 : vector<16x784xf32>
    %30 = vector.broadcast %cst_20 : f32 to vector<16x784xf32>
    %31 = arith.minimumf %30, %29 : vector<16x784xf32>
    %c0_21 = arith.constant 0 : index
    %c0_22 = arith.constant 0 : index
    %32 = vector.load %arg8[%c0_21, %c0_22] : memref<16x784xf32, #tpu.memory_space<vmem>>, vector<16x784xf32>
    tpu.vector_store %arg8[%c0_21, %c0_22], %31 {strides = array<i32>} : memref<16x784xf32, #tpu.memory_space<vmem>>, vector<16x784xf32>,
    return
  }
  func.func @transform_0(%arg0: i32) -> (i32, i32) {
    %c0_i32 = arith.constant 0 : i32
    %c0_i32_0 = arith.constant 0 : i32
    return %arg0, %c0_i32 : i32, i32
  }
  func.func @transform_1(%arg0: i32) -> (i32, i32) {
    %c0_i32 = arith.constant 0 : i32
    %c0_i32_0 = arith.constant 0 : i32
    %c0_i32_1 = arith.constant 0 : i32
    return %c0_i32, %c0_i32_0 : i32, i32
  }
  func.func @transform_2(%arg0: i32) -> (i32, i32) {
    %c0_i32 = arith.constant 0 : i32
    %c0_i32_0 = arith.constant 0 : i32
    %c0_i32_1 = arith.constant 0 : i32
    return %c0_i32, %c0_i32_0 : i32, i32
  }
  func.func @transform_3(%arg0: i32) -> (i32, i32) {
    %c0_i32 = arith.constant 0 : i32
    %c0_i32_0 = arith.constant 0 : i32
    %c0_i32_1 = arith.constant 0 : i32
    return %c0_i32, %c0_i32_0 : i32, i32
  }
  func.func @transform_4(%arg0: i32) -> (i32, i32) {
    %c0_i32 = arith.constant 0 : i32
    %c0_i32_0 = arith.constant 0 : i32
    %c0_i32_1 = arith.constant 0 : i32
    return %c0_i32, %c0_i32_0 : i32, i32
  }
  func.func @transform_5(%arg0: i32) -> (i32, i32) {
    %c0_i32 = arith.constant 0 : i32
    %c0_i32_0 = arith.constant 0 : i32
    %c0_i32_1 = arith.constant 0 : i32
    return %c0_i32, %c0_i32_0 : i32, i32
  }
  func.func @transform_6(%arg0: i32) -> (i32, i32) {
    %c0_i32 = arith.constant 0 : i32
    %c0_i32_0 = arith.constant 0 : i32
    %c0_i32_1 = arith.constant 0 : i32
    return %c0_i32, %c0_i32_0 : i32, i32
  }
  func.func @transform_7(%arg0: i32) -> (i32, i32) {
    %c0_i32 = arith.constant 0 : i32
    %c0_i32_0 = arith.constant 0 : i32
    return %arg0, %c0_i32 : i32, i32
  }
}

</mosaic_0001>

<bundles_post_ra>
// kernel: encoder_decoder_forward.1
= control target key start
LH: loop header
LB: loop body
LE: loop exit
PB: predicated region body
PF: predicated region fallthrough
CT: control target
= control target key end

     0   :  { %v1891_v38 = vmov 0.0   ;;  %vm1892_vm0 = vmmov 0   ;;  %vm469_vm1 = vcmask 130048   ;;  %s2389_s1 = inlined_call_operand.vmem [shape: bf16[784,128], index: 1, kind: input, shape index: {}]   ;;  %s2390_s0 = inlined_call_operand.vmem [shape: bf16[16,784], index: 0, kind: input, shape index: {}]   ;;  %s2391_s3 = inlined_call_operand.vmem [shape: bf16[128,128], index: 3, kind: input, shape index: {}]   ;;  %s2392_s5 = inlined_call_operand.vmem [shape: bf16[128,784], index: 5, kind: input, shape index: {}]   ;;  %s2393_s2 = inlined_call_operand.vmem [shape: f32[1,128], index: 2, kind: input, shape index: {}]   ;;  %s2394_s4 = inlined_call_operand.vmem [shape: f32[1,128], index: 4, kind: input, shape index: {}]   ;;  %s2395_s6 = inlined_call_operand.vmem [shape: f32[1,784], index: 6, kind: input, shape index: {}]   ;;  %s2396_s7 = inlined_call_operand.vmem [shape: f32[16,784], index: 7, kind: output, shape index: {}]  }
   0x1   :  { %v1688_v0 = vld [vmem:[%s2389_s1 + $0x78] sm:$0xff]   ;;  %v1692_v4 = vld [vmem:[%s2389_s1 + $0x70] sm:$0xff]   ;;  %v1696_v8 = vld [vmem:[%s2389_s1 + $0x68] sm:$0xff]  }
   0x2   :  { %v1689_v1 = vld [vmem:[%s2389_s1 + $0x38] sm:$0xff]   ;;  %1553 = vmatprep.subr.bf16.mxu0 %v1688_v0  ;;  %v1693_v5 = vld [vmem:[%s2389_s1 + $0x30] sm:$0xff]   ;;  %v1697_v9 = vld [vmem:[%s2389_s1 + $0x28] sm:$0xff]  }
   0x3   :  { %v1690_v2 = vld [vmem:[%s2389_s1 + $0xf8] sm:$0xff]   ;;  %1554 = vmatpush3.bf16.msra.mxu0 %v1689_v1  ;;  %v1694_v6 = vld [vmem:[%s2389_s1 + $0xf0] sm:$0xff]   ;;  %v1698_v10 = vld [vmem:[%s2389_s1 + $0xe8] sm:$0xff]  }
   0x4   :  { %v1691_v3 = vld [vmem:[%s2389_s1 + $0xb8] sm:$0xff]   ;;  %1575 = vmatprep.subr.bf16.mxu1 %v1690_v2  ;;  %1555 = vmatprep.subr.bf16.mxu0 %v1692_v4  ;;  %v1695_v7 = vld [vmem:[%s2389_s1 + $0xb0] sm:$0xff]   ;;  %v1699_v11 = vld [vmem:[%s2389_s1 + $0xa8] sm:$0xff]  }
   0x5   :  { %1576 = vmatpush3.bf16.msra.mxu1 %v1691_v3  ;;  %v1700_v12 = vld [vmem:[%s2389_s1 + $0x60] sm:$0xff]   ;;  %v1704_v16 = vld [vmem:[%s2389_s1 + $0x58] sm:$0xff]   ;;  %v1708_v20 = vld [vmem:[%s2389_s1 + $0x50] sm:$0xff]  }
   0x6   :  { %1577 = vmatprep.subr.bf16.mxu1 %v1694_v6  ;;  %v1701_v13 = vld [vmem:[%s2389_s1 + $0x20] sm:$0xff]   ;;  %v1705_v17 = vld [vmem:[%s2389_s1 + $0x18] sm:$0xff]   ;;  %v1709_v21 = vld [vmem:[%s2389_s1 + $0x10] sm:$0xff]  }
   0x7   :  { %1556 = vmatpush3.bf16.msra.mxu0 %v1693_v5  ;;  %v1702_v14 = vld [vmem:[%s2389_s1 + $0xe0] sm:$0xff]   ;;  %v1706_v18 = vld [vmem:[%s2389_s1 + $0xd8] sm:$0xff]   ;;  %v1710_v22 = vld [vmem:[%s2389_s1 + $0xd0] sm:$0xff]  }
   0x8   :  { %1557 = vmatprep.subr.bf16.mxu0 %v1696_v8  ;;  %v1703_v15 = vld [vmem:[%s2389_s1 + $0xa0] sm:$0xff]   ;;  %v1707_v19 = vld [vmem:[%s2389_s1 + $0x98] sm:$0xff]   ;;  %v1711_v23 = vld [vmem:[%s2389_s1 + $0x90] sm:$0xff]  }
   0x9   :  { %1578 = vmatpush3.bf16.msra.mxu1 %v1695_v7  ;;  %v1712_v24 = vld [vmem:[%s2389_s1 + $0x48] sm:$0xff]   ;;  %v1716_v28 = vld [vmem:[%s2389_s1 + $0x40] sm:$0xff]   ;;  %v1723_v34 = vld [vmem:[%s2389_s1 + $0x178] sm:$0xff]  }
   0xa   :  { %1579 = vmatprep.subr.bf16.mxu1 %v1698_v10  ;;  %v1713_v25 = vld [vmem:[%s2389_s1 + $0x8] sm:$0xff]   ;;  %v1717_v29 = vld [vmem:[%s2389_s1] sm:$0xff]   ;;  %v1727_v37 = vld [vmem:[%s2389_s1 + $0x138] sm:$0xff]  }
   0xb   :  { %1558 = vmatpush3.bf16.msra.mxu0 %v1697_v9  ;;  %v1714_v26 = vld [vmem:[%s2389_s1 + $0xc8] sm:$0xff]   ;;  %v1718_v30 = vld [vmem:[%s2389_s1 + $0xc0] sm:$0xff]   ;;  %v1728_v39 = vld [vmem:[%s2389_s1 + $0x170] sm:$0xff]  }
   0xc   :  { %1559 = vmatprep.subr.bf16.mxu0 %v1700_v12  ;;  %v1715_v27 = vld [vmem:[%s2389_s1 + $0x88] sm:$0xff]   ;;  %v1719_v31 = vld [vmem:[%s2390_s0] ss:$28 sps:$4 sm:$0xff]   ;;  %v1729_v40 = vld [vmem:[%s2389_s1 + $0x130] sm:$0xff]  }
   0xd   :  { %1580 = vmatpush3.bf16.msra.mxu1 %v1699_v11  ;;  %v1721_v32 = vld [vmem:[%s2390_s0 + $0x4] ss:$28 sps:$4 sm:$0xff]   ;;  %v1726_v36 = vld [vmem:[%s2390_s0 + $0xc] ss:$28 sps:$4 sm:$0xff]   ;;  %v1734_v45 = vld [vmem:[%s2389_s1 + $0x158] sm:$0xff]  }
   0xe   :  { %1581 = vmatprep.subr.bf16.mxu1 %v1702_v14  ;;  %v1722_v33 = vld [vmem:[%s2389_s1 + $0x80] sm:$0xff]   ;;  %505 = vmatprep.mubr.bf16.mxu0 %v1721_v32  ;;  %v1730_v41 = vld [vmem:[%s2389_s1 + $0x168] sm:$0xff]   ;;  %v1735_v46 = vld [vmem:[%s2389_s1 + $0x118] sm:$0xff]  }
   0xf   :  { %1560 = vmatpush3.bf16.msra.mxu0 %v1701_v13  ;;  %v1724_v35 = vld [vmem:[%s2390_s0 + $0x8] ss:$28 sps:$4 sm:$0xff]   ;;  %546 = vmatprep.mubr.bf16.mxu1 %v1726_v36  ;;  %v1736_v47 = vld [vmem:[%s2389_s1 + $0x150] sm:$0xff]   ;;  %v1747_v57 = vld [vmem:[%s2391_s3 + $0x38] sm:$0xff]  }
  0x10   :  { %1561 = vmatprep.subr.bf16.mxu0 %v1704_v16  ;;  %v1731_v42 = vld [vmem:[%s2389_s1 + $0x128] sm:$0xff]   ;;  %v1732_v43 = vld [vmem:[%s2389_s1 + $0x160] sm:$0xff]   ;;  %v1745_v49 = vld [vmem:[%s2390_s0 + $0x14] ss:$28 sps:$4 sm:$0xff]  }
  0x11   :  { %1582 = vmatpush3.bf16.msra.mxu1 %v1703_v15  ;;  %v1733_v44 = vld [vmem:[%s2389_s1 + $0x120] sm:$0xff]   ;;  %v1746_v50 = vld [vmem:[%s2390_s0 + $0x18] ss:$28 sps:$4 sm:$0xff]   ;;  %v1738_v52 = vld [vmem:[%s2389_s1 + $0x148] sm:$0xff]  }
  0x12   :  { %1583 = vmatprep.subr.bf16.mxu1 %v1706_v18  ;;  %v1742_v48 = vld [vmem:[%s2389_s1 + $0x180] sm:$0xff]   ;;  %v1737_v51 = vld [vmem:[%s2389_s1 + $0x110] sm:$0xff]   ;;  %v1739_v53 = vld [vmem:[%s2389_s1 + $0x108] sm:$0xff]  }
  0x13   :  { %1562 = vmatpush3.bf16.msra.mxu0 %v1705_v17  ;;  %v1740_v54 = vld [vmem:[%s2389_s1 + $0x140] sm:$0xff]   ;;  %v1743_v56 = vld [vmem:[%s2390_s0 + $0x10] ss:$28 sps:$4 sm:$0xff]   ;;  %v1751_v61 = vld [vmem:[%s2391_s3 + $0x18] sm:$0xff]  }
  0x14   :  { %1563 = vmatprep.subr.bf16.mxu0 %v1708_v20  ;;  %v1741_v55 = vld [vmem:[%s2389_s1 + $0x100] sm:$0xff]   ;;  %v1748_v58 = vld [vmem:[%s2391_s3 + $0x30] sm:$0xff]   ;;  %v1749_v59 = vld [vmem:[%s2391_s3 + $0x28] sm:$0xff]  }
  0x15   :  { %1584 = vmatpush3.bf16.msra.mxu1 %v1707_v19  ;;  %v1750_v60 = vld [vmem:[%s2391_s3 + $0x20] sm:$0xff]   ;;  %v1752_v62 = vld [vmem:[%s2391_s3 + $0x10] sm:$0xff]   ;;  %v1753_v63 = vld [vmem:[%s2391_s3 + $0x8] sm:$0xff]  }
  0x16   :  { %1585 = vmatprep.subr.bf16.mxu1 %v1710_v22  ;;  %v1754_v0 = vld [vmem:[%s2391_s3] sm:$0xff]   ;;  %v1757_v2 = vld [vmem:[%s2392_s5 + $0x18c] ss:$28 sps:$4 sm:$0xff]   ;;  %v1760_v3 = vld [vmem:[%s2392_s5 + $0x194] ss:$28 sps:$4 sm:$0xff]  }
  0x17   :  { %1564 = vmatpush3.bf16.msra.mxu0 %v1709_v21  ;;  %v1755_v1 = vld [vmem:[%s2392_s5 + $0x188] ss:$28 sps:$4 sm:$0xff]   ;;  %v1763_v4 = vld [vmem:[%s2392_s5 + $0x154] ss:$28 sps:$4 sm:$0xff]   ;;  %v1769_v6 = vld [vmem:[%s2392_s5 + $0x11c] ss:$28 sps:$4 sm:$0xff]  }
  0x18   :  { %1565 = vmatprep.subr.bf16.mxu0 %v1712_v24  ;;  %v1761_v5 = vld [vmem:[%s2392_s5 + $0x150] ss:$28 sps:$4 sm:$0xff]   ;;  %v1767_v7 = vld [vmem:[%s2392_s5 + $0x118] ss:$28 sps:$4 sm:$0xff]   ;;  %v1775_v8 = vld [vmem:[%s2392_s5 + $0xe4] ss:$28 sps:$4 sm:$0xff]  }
  0x19   :  { %1586 = vmatpush3.bf16.msra.mxu1 %v1711_v23  ;;  %v1773_v9 = vld [vmem:[%s2392_s5 + $0xe0] ss:$28 sps:$4 sm:$0xff]   ;;  %v1781_v10 = vld [vmem:[%s2392_s5 + $0xac] ss:$28 sps:$4 sm:$0xff]   ;;  %v1787_v12 = vld [vmem:[%s2392_s5 + $0x74] ss:$28 sps:$4 sm:$0xff]  }
  0x1a   :  { %1587 = vmatprep.subr.bf16.mxu1 %v1714_v26  ;;  %v1779_v11 = vld [vmem:[%s2392_s5 + $0xa8] ss:$28 sps:$4 sm:$0xff]   ;;  %v1785_v13 = vld [vmem:[%s2392_s5 + $0x70] ss:$28 sps:$4 sm:$0xff]   ;;  %v1430_v26 = vld [vmem:[%s2393_s2] ss:$0 sm:$0xff] }
  0x1b   :  { %1566 = vmatpush3.bf16.msra.mxu0 %v1713_v25 }
  0x1c   :  { %1567 = vmatprep.subr.bf16.mxu0 %v1716_v28 }
  0x1d   :  { %1588 = vmatpush3.bf16.msra.mxu1 %v1715_v27 }
  0x1e   :  { %1589 = vmatprep.subr.bf16.mxu1 %v1718_v30 }
  0x1f   :  { %1568 = vmatpush3.bf16.msra.mxu0 %v1717_v29 }
  0x20   :  { %1597 = vmatprep.subr.bf16.mxu0 %v1723_v34 }
  0x21   :  { %1590 = vmatpush3.bf16.msra.mxu1 %v1722_v33 }
  0x22   :  { %506 = vmatmul.mubr.bf16.vlgmr.msra.gmra.mxu0 %v1719_v31  ;;  %1639 = vmatprep.subr.bf16.mxu1 %v1891_v38 }
  0x23   :  { %1598 = vmatpush3.bf16.msra.mxu0 %v1727_v37  ;;  %587 = vmatprep.mubr.bf16.mxu0 %v1745_v49 }
  0x24   :  { %547 = vmatmul.mubr.bf16.vlgmr.msra.gmra.mxu1 %v1724_v35  ;;  %1599 = vmatprep.subr.bf16.mxu0 %v1728_v39 }
  0x25   :  { %1641 = vmatprep.mubr.msk.bf16.mxu1 %vm1892_vm0, %v1891_v38  ;;  %1640 = vmatpush3.bf16.msra.mxu1 %v1742_v48  ;;  %v1758_v48 = vld [vmem:[%s2392_s5 + $0x190] ss:$28 sps:$4 sm:$0xff]  }
  0x26   :  { %1645 = vmatprep.subr.bf16.mxu1 %v1891_v38 }
  0x27   :  { %1600 = vmatpush3.bf16.msra.mxu0 %v1729_v40 }
  0x28   :  { %1601 = vmatprep.subr.bf16.mxu0 %v1730_v41 }
  0x2b   :  { %1602 = vmatpush3.bf16.msra.mxu0 %v1731_v42 }
  0x2c   :  { %1603 = vmatprep.subr.bf16.mxu0 %v1732_v43  ;;  %1642 = vmatmul.mubr.msk.bf16.vlgmr.msra.gmra.mxu1 %vm469_vm1, %v1746_v50  ;;  %v1766_v50 = vld [vmem:[%s2392_s5 + $0x15c] ss:$28 sps:$4 sm:$0xff]  }
  0x2d   :  { %1661 = vmatprep.mubr.msk.bf16.mxu1 %vm1892_vm0, %v1891_v38  ;;  %1646 = vmatpush3.bf16.msra.mxu1 %v1747_v57  ;;  %v1782_v57 = vld [vmem:[%s2392_s5 + $0xb0] ss:$28 sps:$4 sm:$0xff]  }
  0x2e   :  { %1647 = vmatprep.subr.bf16.mxu1 %v1891_v38 }
  0x2f   :  { %1604 = vmatpush3.bf16.msra.mxu0 %v1733_v44 }
  0x30   :  { %1605 = vmatprep.subr.bf16.mxu0 %v1734_v45 }
  0x31   :  { %1648 = vmatpush3.bf16.msra.mxu1 %v1748_v58  ;;  %v1790_v58 = vld [vmem:[%s2392_s5 + $0x7c] ss:$28 sps:$4 sm:$0xff]  }
  0x32   :  { %1649 = vmatprep.subr.bf16.mxu1 %v1891_v38 }
  0x33   :  { %1606 = vmatpush3.bf16.msra.mxu0 %v1735_v46 }
  0x34   :  { %1607 = vmatprep.subr.bf16.mxu0 %v1736_v47 }
  0x35   :  { %1650 = vmatpush3.bf16.msra.mxu1 %v1749_v59  ;;  %v1788_v59 = vld [vmem:[%s2392_s5 + $0x78] ss:$28 sps:$4 sm:$0xff]  }
  0x36   :  { %1651 = vmatprep.subr.bf16.mxu1 %v1891_v38 }
  0x37   :  { %1608 = vmatpush3.bf16.msra.mxu0 %v1737_v51  ;;  %v1764_v51 = vld [vmem:[%s2392_s5 + $0x158] ss:$28 sps:$4 sm:$0xff]  }
  0x38   :  { %1609 = vmatprep.subr.bf16.mxu0 %v1738_v52  ;;  %v1772_v52 = vld [vmem:[%s2392_s5 + $0x124] ss:$28 sps:$4 sm:$0xff]  }
  0x39   :  { %1652 = vmatpush3.bf16.msra.mxu1 %v1750_v60  ;;  %v1793_v60 = vld [vmem:[%s2392_s5 + $0x3c] ss:$28 sps:$4 sm:$0xff]  }
  0x3a   :  { %1653 = vmatprep.subr.bf16.mxu1 %v1891_v38 }
  0x3b   :  { %1610 = vmatpush3.bf16.msra.mxu0 %v1739_v53  ;;  %v1770_v53 = vld [vmem:[%s2392_s5 + $0x120] ss:$28 sps:$4 sm:$0xff]  }
  0x3c   :  { %1611 = vmatprep.subr.bf16.mxu0 %v1740_v54  ;;  %v1778_v54 = vld [vmem:[%s2392_s5 + $0xec] ss:$28 sps:$4 sm:$0xff]  }
  0x3d   :  { %1654 = vmatpush3.bf16.msra.mxu1 %v1751_v61  ;;  %v1796_v61 = vld [vmem:[%s2392_s5 + $0x44] ss:$28 sps:$4 sm:$0xff]  }
  0x3e   :  { %1655 = vmatprep.subr.bf16.mxu1 %v1891_v38 }
  0x3f   :  { %1612 = vmatpush3.bf16.msra.mxu0 %v1741_v55  ;;  %v1776_v55 = vld [vmem:[%s2392_s5 + $0xe8] ss:$28 sps:$4 sm:$0xff]  }
  0x40   :  { %1144 = vmatprep.subr.bf16.mxu0 %v1757_v2  ;;  %v1797_v2 = vld [vmem:[%s2392_s5] ss:$28 sps:$4 sm:$0xff]  }
  0x41   :  { %1656 = vmatpush3.bf16.msra.mxu1 %v1752_v62  ;;  %v1791_v62 = vld [vmem:[%s2392_s5 + $0x38] ss:$28 sps:$4 sm:$0xff]  }
  0x42   :  { %588 = vmatmul.mubr.bf16.vlgmr.msra.gmra.mxu0 %v1743_v56  ;;  %1657 = vmatprep.subr.bf16.mxu1 %v1891_v38  ;;  %v1784_v56 = vld [vmem:[%s2392_s5 + $0xb4] ss:$28 sps:$4 sm:$0xff]  }
  0x43   :  { %1145 = vmatpush1.bf16.msra.mxu0 %v1755_v1  ;;  %v1802_v1 = vld [vmem:[%s2392_s5 + $0xc] ss:$28 sps:$4 sm:$0xff]  }
  0x44   :  { %1146 = vmatprep.subr.bf16.mxu0 %v1763_v4  ;;  %v1805_v4 = vld [vmem:[%s2392_s5 + $0x19c] ss:$28 sps:$4 sm:$0xff]  }
  0x45   :  { %1658 = vmatpush3.bf16.msra.mxu1 %v1753_v63  ;;  %v1794_v63 = vld [vmem:[%s2392_s5 + $0x40] ss:$28 sps:$4 sm:$0xff]  }
  0x46   :  { %1659 = vmatprep.subr.bf16.mxu1 %v1891_v38 }
  0x47   :  { %1147 = vmatpush1.bf16.msra.mxu0 %v1761_v5  ;;  %v1893_v5 = vmov 0  }
  0x48   :  { %1148 = vmatprep.subr.bf16.mxu0 %v1769_v6  ;;  %1176 = vmatprep.mubr.bf16.mxu0 %v1893_v5  ;;  %v1488_v6 = vld [vmem:[%s2394_s4] ss:$0 sm:$0xff] }
  0x49   :  { %1660 = vmatpush3.bf16.msra.mxu1 %v1754_v0  ;;  %v1799_v0 = vld [vmem:[%s2392_s5 + $0x4] ss:$28 sps:$4 sm:$0xff]  }
  0x4a   :  { %1187 = vmatprep.subr.bf16.mxu1 %v1760_v3  ;;  %v1800_v3 = vld [vmem:[%s2392_s5 + $0x8] ss:$28 sps:$4 sm:$0xff]  }
  0x4b   :  { %1149 = vmatpush1.bf16.msra.mxu0 %v1767_v7 }
  0x4c   :  { %1150 = vmatprep.subr.bf16.mxu0 %v1775_v8 }
  0x4f   :  { %1151 = vmatpush1.bf16.msra.mxu0 %v1773_v9 }
  0x50   :  { %1152 = vmatprep.subr.bf16.mxu0 %v1781_v10 }
  0x53   :  { %1153 = vmatpush1.bf16.msra.mxu0 %v1779_v11 }
  0x54   :  { %1154 = vmatprep.subr.bf16.mxu0 %v1787_v12 }
  0x57   :  { %1155 = vmatpush1.bf16.msra.mxu0 %v1785_v13 }
  0x58   :  { %1156 = vmatprep.subr.bf16.mxu0 %v1793_v60 }
  0x5b   :  { %1157 = vmatpush1.bf16.msra.mxu0 %v1791_v62 }
  0x5c   :  { %1158 = vmatprep.subr.bf16.mxu0 %v1799_v0 }
  0x5f   :  { %1159 = vmatpush1.bf16.msra.mxu0 %v1797_v2 }
  0x60   :  { %1230 = vmatprep.subr.bf16.mxu0 %v1805_v4 }
  0xe2   :  { %v1569_v17 = vpop.f32.mrf.mxu0 }
  0xe4   :  { %v1591_v14 = vpop.f32.mrf.mxu1  ;;  %v1570_v20 = vpop.f32.mrf.mxu0 }
  0xe5   :  { %v1571_v25 = vadd.f32 %v1570_v20, %v1569_v17  ;;  %v1810_v20 = vld [vmem:[%s2392_s5 + $0x168] ss:$28 sps:$4 sm:$0xff]  }
  0xe6   :  { %v1592_v15 = vpop.f32.mrf.mxu1  ;;  %v1572_v23 = vpop.f32.mrf.mxu0 }
  0xe7   :  { %v508_v28 = vadd.f32 %v1571_v25, %v1430_v26  ;;  %v1593_v29 = vadd.f32 %v1592_v15, %v1591_v14  ;;  %v1803_v15 = vld [vmem:[%s2392_s5 + $0x198] ss:$28 sps:$4 sm:$0xff]   ;;  %v1815_v25 = vld [vmem:[%s2392_s5 + $0xf0] ss:$28 sps:$4 sm:$0xff]  }
  0xe8   :  { %v1594_v16 = vpop.f32.mrf.mxu1  ;;  %v1573_v27 = vpop.f32.mrf.mxu0 }
  0xe9   :  { %v1574_v30 = vadd.f32 %v1573_v27, %v1572_v23  ;;  %v549_v33 = vadd.f32 %v1593_v29, %v508_v28  ;;  %v1814_v23 = vld [vmem:[%s2392_s5 + $0x130] ss:$28 sps:$4 sm:$0xff]   ;;  %v1821_v27 = vld [vmem:[%s2392_s5 + $0xbc] ss:$28 sps:$4 sm:$0xff]  }
  0xea   :  { %v1595_v18 = vpop.f32.mrf.mxu1  ;;  %v1819_v28 = vld [vmem:[%s2392_s5 + $0xb8] ss:$28 sps:$4 sm:$0xff]   ;;  %v1822_v29 = vld [vmem:[%s2392_s5 + $0xc0] ss:$28 sps:$4 sm:$0xff]  }
  0xeb   :  { %v511_v34 = vadd.f32 %v1574_v30, %v1430_v26  ;;  %v1596_v35 = vadd.f32 %v1595_v18, %v1594_v16  ;;  %v1806_v16 = vld [vmem:[%s2392_s5 + $0x1a0] ss:$28 sps:$4 sm:$0xff]   ;;  %v1818_v26 = vld [vmem:[%s2392_s5 + $0xf8] ss:$28 sps:$4 sm:$0xff]  }
  0xec   :  { %v630_v19 = vpop.f32.mrf.mxu1  ;;  %v1809_v18 = vld [vmem:[%s2392_s5 + $0x164] ss:$28 sps:$4 sm:$0xff]  }
  0xed   :  { %v552_v41 = vadd.f32 %v1596_v35, %v511_v34  ;;  %v1825_v30 = vld [vmem:[%s2392_s5 + $0x84] ss:$28 sps:$4 sm:$0xff]   ;;  %v1830_v35 = vld [vmem:[%s2392_s5 + $0x50] ss:$28 sps:$4 sm:$0xff]  }
  0xee   :  { %v1643_v21 = vpop.f32.mrf.mxu1  ;;  %v1827_v34 = vld [vmem:[%s2392_s5 + $0x48] ss:$28 sps:$4 sm:$0xff]  }
  0xef   :  { %v1813_v21 = vld [vmem:[%s2392_s5 + $0x12c] ss:$28 sps:$4 sm:$0xff]  }
  0xf0   :  { %v633_v22 = vpop.f32.mrf.mxu1 }
  0xf2   :  { %v1644_v24 = vpop.f32.mrf.mxu1 }
  0xf3   :  { %v1817_v24 = vld [vmem:[%s2392_s5 + $0xf4] ss:$28 sps:$4 sm:$0xff]  }
 0x102   :  { %v1613_v31 = vpop.f32.mrf.mxu0 }
 0x104   :  { %v1614_v32 = vpop.f32.mrf.mxu0 }
 0x105   :  { %v1615_v36 = vadd.f32 %v1614_v32, %v1613_v31  ;;  %v1823_v31 = vld [vmem:[%s2392_s5 + $0x80] ss:$28 sps:$4 sm:$0xff]   ;;  %v1826_v32 = vld [vmem:[%s2392_s5 + $0x88] ss:$28 sps:$4 sm:$0xff]  }
 0x106   :  { %v1616_v37 = vpop.f32.mrf.mxu0 }
 0x107   :  { %v590_v39 = vadd.f32 %v1615_v36, %v549_v33  ;;  %v1829_v33 = vld [vmem:[%s2392_s5 + $0x4c] ss:$28 sps:$4 sm:$0xff]   ;;  %v1833_v36 = vld [vmem:[%s2392_s5 + $0x14] ss:$28 sps:$4 sm:$0xff]  }
 0x108   :  { %v1617_v40 = vpop.f32.mrf.mxu0 }
 0x109   :  { %v1618_v42 = vadd.f32 %v1617_v40, %v1616_v37  ;;  %v631_v43 = vadd.f32 %v630_v19, %v590_v39  ;;  %v1807_v19 = vld [vmem:[%s2392_s5 + $0x160] ss:$28 sps:$4 sm:$0xff]   ;;  %v1831_v37 = vld [vmem:[%s2392_s5 + $0x10] ss:$28 sps:$4 sm:$0xff]   ;;  %v1834_v39 = vld [vmem:[%s2392_s5 + $0x18] ss:$28 sps:$4 sm:$0xff]   ;;  %v821_v40 = vlaneseq }
 0x10b   :  { %v593_v44 = vadd.f32 %v1618_v42, %v552_v41  ;;  %v637_v46 = vmax.f32 %v631_v43, 0.0  ;;  %v2324_v41 = vshrl.u32 %v821_v40, 7 }
 0x10d   :  { %v634_v45 = vadd.f32 %v633_v22, %v593_v44  ;;  %v1811_v22 = vld [vmem:[%s2392_s5 + $0x128] ss:$28 sps:$4 sm:$0xff]   ;;  %v823_v42 = vsub.s32 0, %v2324_v41  ;;  %v831_v43 = vsub.s32 2, %v2324_v41 }
 0x10e   :  { %v2331_v44 = vld [vmem:[%s2395_s6] sm:$0x7f] }
 0x10f   :  { %v638_v47 = vmax.f32 %v634_v45, 0.0  ;;  %v827_v45 = vsub.s32 1, %v2324_v41 }
 0x111   :  { %v639_v49 = vpack.c.bf16 %v638_v47, %v637_v46  ;;  %v824_v46 = vrot.slane %v2331_v44, %v823_v42  ;;  %v832_v47 = vrot.slane %v2331_v44, %v831_v43 }
 0x113   :  { %1662 = vmatmul.mubr.bf16.vlgmr.msra.gmra.mxu1 %v639_v49 }
 0x114   :  { %1188 = vmatpush1.bf16.msra.mxu1 %v1758_v48  ;;  %1219 = vmatprep.mubr.bf16.mxu1 %v1893_v5  ;;  %v828_v48 = vrot.slane %v2331_v44, %v827_v45 }
 0x115   :  { %1189 = vmatprep.subr.bf16.mxu1 %v1766_v50 }
 0x118   :  { %1190 = vmatpush1.bf16.msra.mxu1 %v1764_v51 }
 0x119   :  { %1191 = vmatprep.subr.bf16.mxu1 %v1772_v52 }
 0x11c   :  { %1192 = vmatpush1.bf16.msra.mxu1 %v1770_v53 }
 0x11d   :  { %1193 = vmatprep.subr.bf16.mxu1 %v1778_v54 }
 0x120   :  { %1194 = vmatpush1.bf16.msra.mxu1 %v1776_v55 }
 0x121   :  { %1195 = vmatprep.subr.bf16.mxu1 %v1784_v56 }
 0x124   :  { %1196 = vmatpush1.bf16.msra.mxu1 %v1782_v57 }
 0x125   :  { %1197 = vmatprep.subr.bf16.mxu1 %v1790_v58 }
 0x128   :  { %1198 = vmatpush1.bf16.msra.mxu1 %v1788_v59 }
 0x129   :  { %1199 = vmatprep.subr.bf16.mxu1 %v1796_v61 }
 0x12c   :  { %1200 = vmatpush1.bf16.msra.mxu1 %v1794_v63 }
 0x12d   :  { %1201 = vmatprep.subr.bf16.mxu1 %v1802_v1 }
 0x130   :  { %1202 = vmatpush1.bf16.msra.mxu1 %v1800_v3 }
 0x131   :  { %1665 = vmatprep.subr.bf16.mxu1 %v1891_v38 }
 0x1d3   :  { %v745_v7 = vpop.f32.mrf.mxu1 }
 0x1d4   :  { %v746_v9 = vadd.f32 %v1488_v6, %v745_v7 }
 0x1d5   :  { %v1663_v8 = vpop.f32.mrf.mxu1 }
 0x1d6   :  { %v752_v13 = vmax.f32 %v746_v9, 0.0 }
 0x1d7   :  { %v748_v10 = vpop.f32.mrf.mxu1 }
 0x1d8   :  { %v749_v11 = vadd.f32 %v1488_v6, %v748_v10 }
 0x1d9   :  { %v1664_v12 = vpop.f32.mrf.mxu1 }
 0x1da   :  { %v753_v14 = vmax.f32 %v749_v11, 0.0 }
 0x1dc   :  { %v754_v17 = vpack.c.bf16 %v753_v14, %v752_v13 }
 0x1de   :  { %1177 = vmatmul.mubr.bf16.vlgmr.msra.gmra.mxu0 %v754_v17  ;;  %1220 = vmatmul.mubr.bf16.vlgmr.msra.gmra.mxu1 %v754_v17 }
 0x1df   :  { %1231 = vmatpush1.bf16.msra.mxu0 %v1803_v15  ;;  %1666 = vmatpush3.bf16.msra.mxu1 %v1806_v16 }
 0x1e0   :  { %1232 = vmatprep.subr.bf16.mxu0 %v1809_v18  ;;  %1667 = vmatprep.subr.bf16.mxu1 %v1891_v38 }
 0x1e1   :  { %1262 = vmatprep.mubr.bf16.mxu0 %v1893_v5  ;;  %1681 = vmatprep.mubr.msk.bf16.mxu1 %vm1892_vm0, %v1891_v38 }
 0x1e3   :  { %1233 = vmatpush1.bf16.msra.mxu0 %v1807_v19  ;;  %1668 = vmatpush3.bf16.msra.mxu1 %v1810_v20 }
 0x1e4   :  { %1234 = vmatprep.subr.bf16.mxu0 %v1813_v21  ;;  %1669 = vmatprep.subr.bf16.mxu1 %v1891_v38 }
 0x1e7   :  { %1235 = vmatpush1.bf16.msra.mxu0 %v1811_v22  ;;  %1670 = vmatpush3.bf16.msra.mxu1 %v1814_v23 }
 0x1e8   :  { %1236 = vmatprep.subr.bf16.mxu0 %v1817_v24  ;;  %1671 = vmatprep.subr.bf16.mxu1 %v1891_v38 }
 0x1eb   :  { %1237 = vmatpush1.bf16.msra.mxu0 %v1815_v25  ;;  %1672 = vmatpush3.bf16.msra.mxu1 %v1818_v26 }
 0x1ec   :  { %1238 = vmatprep.subr.bf16.mxu0 %v1821_v27  ;;  %1673 = vmatprep.subr.bf16.mxu1 %v1891_v38  ;;  %v839_v27 = vsub.s32 4, %v2324_v41 }
 0x1ef   :  { %1239 = vmatpush1.bf16.msra.mxu0 %v1819_v28  ;;  %1674 = vmatpush3.bf16.msra.mxu1 %v1822_v29  ;;  %v847_v28 = vsub.s32 6, %v2324_v41 }
 0x1f0   :  { %1240 = vmatprep.subr.bf16.mxu0 %v1825_v30  ;;  %1675 = vmatprep.subr.bf16.mxu1 %v1891_v38 }
 0x1f3   :  { %1241 = vmatpush1.bf16.msra.mxu0 %v1823_v31  ;;  %1676 = vmatpush3.bf16.msra.mxu1 %v1826_v32 }
 0x1f4   :  { %1242 = vmatprep.subr.bf16.mxu0 %v1829_v33  ;;  %1677 = vmatprep.subr.bf16.mxu1 %v1891_v38  ;;  %v843_v33 = vsub.s32 5, %v2324_v41 }
 0x1f6   :  { %v844_v40 = vrot.slane %v2331_v44, %v843_v33 }
 0x1f7   :  { %1243 = vmatpush1.bf16.msra.mxu0 %v1827_v34  ;;  %1678 = vmatpush3.bf16.msra.mxu1 %v1830_v35 }
 0x1f8   :  { %1244 = vmatprep.subr.bf16.mxu0 %v1833_v36  ;;  %1679 = vmatprep.subr.bf16.mxu1 %v1891_v38  ;;  %v835_v38 = vsub.s32 3, %v2324_v41 }
 0x1fa   :  { %v836_v49 = vrot.slane %v2331_v44, %v835_v38 }
 0x1fb   :  { %1245 = vmatpush1.bf16.msra.mxu0 %v1831_v37  ;;  %1680 = vmatpush3.bf16.msra.mxu1 %v1834_v39  ;;  %v840_v37 = vrot.slane %v2331_v44, %v839_v27  ;;  %v848_v39 = vrot.slane %v2331_v44, %v847_v28 }
 0x1fe   :  { %1263 = vmatmul.mubr.bf16.vlgmr.msra.gmra.mxu0 %v754_v17  ;;  %1682 = vmatmul.mubr.bf16.vlgmr.msra.gmra.mxu1 %v754_v17 }
 0x29e   :  { %v1178_v50 = vpop.f32.mrf.mxu0  ;;  %v1221_v51 = vpop.f32.mrf.mxu1 }
 0x29f   :  { %v1179_v52 = vadd.f32 %v1178_v50, %v824_v46  ;;  %v1222_v53 = vadd.f32 %v1221_v51, %v832_v47 }
 0x2a0   :  { %v1180_v54 = vpop.f32.mrf.mxu0  ;;  %v1223_v55 = vpop.f32.mrf.mxu1 }
 0x2a1   :  { %v1314_v56 = vsub.f32 0.0, %v1179_v52  ;;  %v1316_v57 = vsub.f32 0.0, %v1222_v53  ;;  %v1181_v58 = vadd.f32 %v1180_v54, %v828_v48  ;;  %v1224_v59 = vadd.f32 %v1223_v55, %v836_v49 }
 0x2a2   :  { %v1182_v60 = vpop.f32.mrf.mxu0  ;;  %v1225_v61 = vpop.f32.mrf.mxu1 }
 0x2a3   :  { %v1328_v62 = vmul.f32 1.442695, %v1314_v56  ;;  %v1332_v63 = vmul.f32 1.442695, %v1316_v57  ;;  %v1315_v0 = vsub.f32 0.0, %v1181_v58  ;;  %v1317_v1 = vsub.f32 0.0, %v1224_v59 }
 0x2a4   :  { %v1183_v2 = vadd.f32 %v1182_v60, %v824_v46  ;;  %v1226_v3 = vadd.f32 %v1225_v61, %v832_v47  ;;  %v1184_v4 = vpop.f32.mrf.mxu0  ;;  %v1227_v5 = vpop.f32.mrf.mxu1 }
 0x2a5   :  { %1835 = vpow2.f32 %v1328_v62  ;;  %v1330_v6 = vmul.f32 1.442695, %v1315_v0  ;;  %v1334_v7 = vmul.f32 1.442695, %v1317_v1  ;;  %v1185_v8 = vadd.f32 %v1184_v4, %v828_v48 }
 0x2a6   :  { %1837 = vpow2.f32 %v1332_v63  ;;  %v1321_v9 = vsub.f32 0.0, %v1183_v2  ;;  %v1323_v10 = vsub.f32 0.0, %v1226_v3  ;;  %v1228_v11 = vadd.f32 %v1227_v5, %v836_v49 }
 0x2a7   :  { %1839 = vpow2.f32 %v1330_v6  ;;  %v1322_v12 = vsub.f32 0.0, %v1185_v8 }
 0x2a8   :  { %1841 = vpow2.f32 %v1334_v7  ;;  %v1342_v13 = vmul.f32 1.442695, %v1321_v9  ;;  %v1346_v14 = vmul.f32 1.442695, %v1323_v10  ;;  %v1324_v15 = vsub.f32 0.0, %v1228_v11 }
 0x2a9   :  { %v1344_v16 = vmul.f32 1.442695, %v1322_v12 }
 0x2aa   :  { %1843 = vpow2.f32 %v1342_v13  ;;  %v1348_v17 = vmul.f32 1.442695, %v1324_v15 }
 0x2ab   :  { %1845 = vpow2.f32 %v1346_v14 }
 0x2ac   :  { %1847 = vpow2.f32 %v1344_v16 }
 0x2ad   :  { %1849 = vpow2.f32 %v1348_v17 }
 0x2b2   :  { %v1836_v18 = vpop.eup %1835 }
 0x2b3   :  { %v1838_v19 = vpop.eup %1837  ;;  %v1356_v20 = vadd.f32 1.0, %v1836_v18 }
 0x2b4   :  { %v1840_v21 = vpop.eup %1839  ;;  %v1358_v22 = vadd.f32 1.0, %v1838_v19 }
 0x2b5   :  { %v1842_v23 = vpop.eup %1841  ;;  %1851 = vrcp.f32 %v1356_v20  ;;  %v1357_v24 = vadd.f32 1.0, %v1840_v21 }
 0x2b6   :  { %1853 = vrcp.f32 %v1358_v22  ;;  %v1359_v25 = vadd.f32 1.0, %v1842_v23 }
 0x2b7   :  { %v1844_v26 = vpop.eup %1843  ;;  %1855 = vrcp.f32 %v1357_v24 }
 0x2b8   :  { %v1846_v29 = vpop.eup %1845  ;;  %1857 = vrcp.f32 %v1359_v25  ;;  %v1363_v30 = vadd.f32 1.0, %v1844_v26 }
 0x2b9   :  { %v1848_v31 = vpop.eup %1847  ;;  %v1365_v32 = vadd.f32 1.0, %v1846_v29 }
 0x2ba   :  { %v1850_v34 = vpop.eup %1849  ;;  %1859 = vrcp.f32 %v1363_v30  ;;  %v1364_v35 = vadd.f32 1.0, %v1848_v31 }
 0x2bb   :  { %1861 = vrcp.f32 %v1365_v32  ;;  %v1366_v36 = vadd.f32 1.0, %v1850_v34 }
 0x2bc   :  { %1863 = vrcp.f32 %v1364_v35 }
 0x2bd   :  { %1865 = vrcp.f32 %v1366_v36 }
 0x2be   :  { %v1264_v42 = vpop.f32.mrf.mxu0  ;;  %v1307_v43 = vpop.f32.mrf.mxu1 }
 0x2bf   :  { %v1265_v45 = vadd.f32 %v1264_v42, %v840_v37  ;;  %v1308_v38 = vadd.f32 %v1307_v43, %v848_v39 }
 0x2c0   :  { %v1266_v46 = vpop.f32.mrf.mxu0  ;;  %v1683_v47 = vpop.f32.mrf.mxu1 }
 0x2c1   :  { %v1318_v41 = vsub.f32 0.0, %v1265_v45  ;;  %v1320_v48 = vsub.f32 0.0, %v1308_v38  ;;  %v1267_v49 = vadd.f32 %v1266_v46, %v844_v40 }
 0x2c2   :  { %v1852_v50 = vpop.eup %1851  ;;  %v1268_v51 = vpop.f32.mrf.mxu0 }
 0x2c3   :  { %v1310_v52 = vpop.f32.mrf.mxu1  ;;  %v1854_v53 = vpop.eup %1853  ;;  %v1384_v54 = vmax.f32 %v1852_v50, 0.0  ;;  %v1336_v55 = vmul.f32 1.442695, %v1318_v41  ;;  %v1340_v56 = vmul.f32 1.442695, %v1320_v48  ;;  %v1319_v57 = vsub.f32 0.0, %v1267_v49 }
 0x2c4   :  { %v1856_v58 = vpop.eup %1855  ;;  %v1386_v59 = vmax.f32 %v1854_v53, 0.0  ;;  %v1269_v44 = vadd.f32 %v1268_v51, %v840_v37  ;;  %v1311_v60 = vadd.f32 %v1310_v52, %v848_v39  ;;  %v1270_v61 = vpop.f32.mrf.mxu0 }
 0x2c5   :  { %v1684_v62 = vpop.f32.mrf.mxu1  ;;  %v1858_v63 = vpop.eup %1857  ;;  %v1398_v0 = vmin.f32 %v1384_v54, 1.0  ;;  %v1385_v1 = vmax.f32 %v1856_v58, 0.0  ;;  %1867 = vpow2.f32 %v1336_v55  ;;  %v1338_v2 = vmul.f32 1.442695, %v1319_v57 }
 0x2c6   :  { %v1400_v3 = vmin.f32 %v1386_v59, 1.0  ;;  %v1387_v4 = vmax.f32 %v1858_v63, 0.0  ;;  %1869 = vpow2.f32 %v1340_v56  ;;  %v1325_v5 = vsub.f32 0.0, %v1269_v44 }
 0x2c7   :  { %v1860_v6 = vpop.eup %1859  ;;  %1412 = vst [vmem:[%s2396_s7] sm:$0xff] %v1398_v0  ;;  %v1399_v7 = vmin.f32 %v1385_v1, 1.0  ;;  %1871 = vpow2.f32 %v1338_v2  ;;  %v1327_v8 = vsub.f32 0.0, %v1311_v60  ;;  %v1271_v9 = vadd.f32 %v1270_v61, %v844_v40 }
 0x2c8   :  { %v1862_v10 = vpop.eup %1861  ;;  %1414 = vst [vmem:[%s2396_s7 + $0x10] sm:$0xff] %v1400_v3  ;;  %v1401_v11 = vmin.f32 %v1387_v4, 1.0  ;;  %v1391_v12 = vmax.f32 %v1860_v6, 0.0  ;;  %v1350_v13 = vmul.f32 1.442695, %v1325_v5 }
 0x2c9   :  { %v1864_v14 = vpop.eup %1863  ;;  %1413 = vst [vmem:[%s2396_s7 + $0x8] sm:$0xff] %v1399_v7  ;;  %v1393_v15 = vmax.f32 %v1862_v10, 0.0  ;;  %v1354_v16 = vmul.f32 1.442695, %v1327_v8  ;;  %v1326_v17 = vsub.f32 0.0, %v1271_v9 }
 0x2ca   :  { %v1866_v18 = vpop.eup %1865  ;;  %1415 = vst [vmem:[%s2396_s7 + $0x18] sm:$0xff] %v1401_v11  ;;  %v1405_v19 = vmin.f32 %v1391_v12, 1.0  ;;  %v1392_v20 = vmax.f32 %v1864_v14, 0.0  ;;  %1873 = vpow2.f32 %v1350_v13 }
 0x2cb   :  { %v1407_v21 = vmin.f32 %v1393_v15, 1.0  ;;  %v1394_v22 = vmax.f32 %v1866_v18, 0.0  ;;  %1875 = vpow2.f32 %v1354_v16  ;;  %v1352_v23 = vmul.f32 1.442695, %v1326_v17 }
 0x2cc   :  { %1419 = vst [vmem:[%s2396_s7 + $0x38] sm:$0xff] %v1405_v19  ;;  %v1406_v24 = vmin.f32 %v1392_v20, 1.0 }
 0x2cd   :  { %1421 = vst [vmem:[%s2396_s7 + $0x48] sm:$0xff] %v1407_v21  ;;  %v1408_v25 = vmin.f32 %v1394_v22, 1.0  ;;  %1877 = vpow2.f32 %v1352_v23 }
 0x2ce   :  { %1420 = vst [vmem:[%s2396_s7 + $0x40] sm:$0xff] %v1406_v24 }
 0x2cf   :  { %1422 = vst [vmem:[%s2396_s7 + $0x50] sm:$0xff] %v1408_v25 }
 0x2d2   :  { %v1868_v26 = vpop.eup %1867 }
 0x2d3   :  { %v1870_v27 = vpop.eup %1869  ;;  %v1360_v28 = vadd.f32 1.0, %v1868_v26 }
 0x2d4   :  { %v1872_v29 = vpop.eup %1871  ;;  %v1362_v30 = vadd.f32 1.0, %v1870_v27 }
 0x2d5   :  { %1879 = vrcp.f32 %v1360_v28  ;;  %v1361_v31 = vadd.f32 1.0, %v1872_v29 }
 0x2d6   :  { %1881 = vrcp.f32 %v1362_v30 }
 0x2d7   :  { %v1874_v32 = vpop.eup %1873  ;;  %1883 = vrcp.f32 %v1361_v31 }
 0x2d8   :  { %v1876_v33 = vpop.eup %1875  ;;  %v1367_v34 = vadd.f32 1.0, %v1874_v32 }
 0x2d9   :  { %v1369_v35 = vadd.f32 1.0, %v1876_v33 }
 0x2da   :  { %v1878_v36 = vpop.eup %1877  ;;  %1885 = vrcp.f32 %v1367_v34 }
 0x2db   :  { %1887 = vrcp.f32 %v1369_v35  ;;  %v1368_v37 = vadd.f32 1.0, %v1878_v36 }
 0x2dd   :  { %1889 = vrcp.f32 %v1368_v37 }
 0x2e2   :  { %v1880_v39 = vpop.eup %1879 }
 0x2e3   :  { %v1882_v40 = vpop.eup %1881  ;;  %v1388_v42 = vmax.f32 %v1880_v39, 0.0 }
 0x2e4   :  { %v1884_v43 = vpop.eup %1883  ;;  %v1390_v45 = vmax.f32 %v1882_v40, 0.0 }
 0x2e5   :  { %v1402_v38 = vmin.f32 %v1388_v42, 1.0  ;;  %v1389_v46 = vmax.f32 %v1884_v43, 0.0 }
 0x2e6   :  { %v1404_v47 = vmin.f32 %v1390_v45, 1.0 }
 0x2e7   :  { %v1886_v41 = vpop.eup %1885  ;;  %1416 = vst [vmem:[%s2396_s7 + $0x20] sm:$0xff] %v1402_v38  ;;  %v1403_v48 = vmin.f32 %v1389_v46, 1.0 }
 0x2e8   :  { %v1888_v49 = vpop.eup %1887  ;;  %1418 = vst.msk [vmem:[%s2396_s7 + $0x30] sm:$0xff] %vm469_vm1, %v1404_v47  ;;  %v1395_v50 = vmax.f32 %v1886_v41, 0.0 }
 0x2e9   :  { %1417 = vst [vmem:[%s2396_s7 + $0x28] sm:$0xff] %v1403_v48  ;;  %v1397_v51 = vmax.f32 %v1888_v49, 0.0 }
 0x2ea   :  { %v1890_v52 = vpop.eup %1889  ;;  %v1409_v53 = vmin.f32 %v1395_v50, 1.0 }
 0x2eb   :  { %v1411_v54 = vmin.f32 %v1397_v51, 1.0  ;;  %v1396_v55 = vmax.f32 %v1890_v52, 0.0 }
 0x2ec   :  { %1423 = vst [vmem:[%s2396_s7 + $0x58] sm:$0xff] %v1409_v53 }
 0x2ed   :  { %1425 = vst.msk [vmem:[%s2396_s7 + $0x68] sm:$0xff] %vm469_vm1, %v1411_v54  ;;  %v1410_v56 = vmin.f32 %v1396_v55, 1.0 }
 0x2ef   :  { %1424 = vst [vmem:[%s2396_s7 + $0x60] sm:$0xff] %v1410_v56 }

</bundles_post_ra>
